<compile_context>
chip_gen: v7x
topology: tpu7x:2x2x1
jax: 0.10.0
libtpu: 0.0.40
codegen_flags: <defaults>
</compile_context>

<pallas_src>
import math
import functools

import jax
import jax.numpy as jnp
from jax.experimental import pallas as pl
from jax.experimental.pallas import tpu as pltpu

EPS = 1e-8
LANE = 128


def _norm_conv_kernel(x_ref, w_ref, b_ref, o_ref, acc_ref, *, K, stride, tile_rows):
    """One (batch, row-tile, Cout-tile) per grid step.

    x_ref:   (1, rows_in, Wo, K*Cin)   kw-folded input rows (incl. halo)
    w_ref:   (K, K*Cin, TCO)           pre-normalized weights, kh-major
    b_ref:   (1, TCO)                  f32 bias
    o_ref:   (1, tile_rows*Wo, TCO)    flat, lane-dense output slab
    acc_ref: (tile_rows*Wo, TCO)       f32 VMEM accumulator (scratch)
    """
    xi = x_ref[0]                                       # (rows_in, Wo, K*Cin)
    wo = xi.shape[1]
    kc = xi.shape[2]

    for kh in range(K):                                 # K accumulated MXU dots
        rows = xi[kh:kh + stride * (tile_rows - 1) + 1:stride]   # (tile_rows, Wo, K*Cin)
        lhs = rows.reshape(tile_rows * wo, kc)
        contrib = jnp.dot(lhs, w_ref[kh], preferred_element_type=jnp.float32)
        if kh == 0:
            acc_ref[...] = contrib
        else:
            acc_ref[...] += contrib

    o_ref[0] = (acc_ref[...] + b_ref[...]).astype(o_ref.dtype)


def _pick_tile_rows(Ho, Wo, want_split, target_m=512):
    """Rows per spatial tile: M ~ target_m output pixels, tile_rows*Wo % 8 == 0."""
    base = 8 // math.gcd(Wo, 8)                 # rows needed for sublane alignment
    tr = (max(target_m // max(Wo, 1), 1) // base) * base
    tr = max(base, tr)
    tr = min(tr, Ho)
    if want_split and pl.cdiv(Ho, tr) == 1 and tr >= 2 * base:
        tr = max(base, (tr // 2) // base * base)      # ensure >=2 parallel steps
    if tr < Ho and (tr * Wo) % 8 != 0:
        tr = Ho                                  # full-extent row block is always legal
    return tr


@functools.partial(jax.jit, static_argnames=("stride", "padding"))
def normalized_conv2d(x_nchw, weight_oihw, bias_o=None, *, stride=1, padding=0):
    N, Cin, H, W = x_nchw.shape
    Cout, Cin_w, K, K2 = weight_oihw.shape
    assert Cin_w == Cin and K == K2
    Ho = (H + 2 * padding - K) // stride + 1
    Wo = (W + 2 * padding - K) // stride + 1
    Hp = H + 2 * padding

    # ---- weight normalization: once, in f32 (cast last); sign(0)*EPS == 0 as in torch ----
    w32 = weight_oihw.astype(jnp.float32)
    w_sum = w32.sum(axis=(2, 3), keepdims=True)
    w_sum = jnp.where(jnp.abs(w_sum) < EPS, jnp.sign(w_sum) * EPS, w_sum)
    w_norm = w32 / w_sum                                       # (Cout, Cin, K, K) f32

    # ---- layout glue (plain JAX; fused by XLA under jit) ----
    x = jnp.transpose(x_nchw, (0, 2, 3, 1))                    # NHWC
    x = jnp.pad(x, ((0, 0), (padding, padding), (padding, padding), (0, 0)))

    # kw-fold: lane dim becomes K*Cin (denser for small Cin, no in-kernel stitching)
    col_idx = (jnp.arange(Wo)[:, None] * stride + jnp.arange(K)[None, :]).reshape(-1)
    x_kw = jnp.take(x, col_idx, axis=2).reshape(N, Hp, Wo, K * Cin)

    # ---- Cout tiling ----
    Cout_p = pl.cdiv(Cout, LANE) * LANE
    # 256-wide RHS fills the v6e/v7x MXU; 128 otherwise (a 128 tile is always fine on v5e).
    TCO = 256 if Cout_p % 256 == 0 else LANE
    n_co = Cout_p // TCO

    # ---- spatial row tiling: bounded VMEM per step, enough steps for megacore ----
    tile_rows = _pick_tile_rows(Ho, Wo, want_split=(N * n_co == 1))
    n_t = pl.cdiv(Ho, tile_rows)
    rows_in = (tile_rows - 1) * stride + K
    tile_m = tile_rows * Wo

    # duplicate the (K - stride) halo rows per tile so all BlockSpecs stay plain Blocked
    need_rows = (n_t * tile_rows - 1) * stride + K
    if need_rows > Hp:
        x_kw = jnp.pad(x_kw, ((0, 0), (0, need_rows - Hp), (0, 0), (0, 0)))
    row_idx = (jnp.arange(n_t)[:, None] * (tile_rows * stride)
               + jnp.arange(rows_in)[None, :]).reshape(-1)
    x_tiles = jnp.take(x_kw, row_idx, axis=1)                  # (N, n_t*rows_in, Wo, K*Cin)

    # weights -> (kh, kw*Cin, Cout_p) in input dtype; bias -> (1, Cout_p) f32
    w = jnp.transpose(w_norm, (2, 3, 1, 0)).reshape(K, K * Cin, Cout)
    w = jnp.pad(w, ((0, 0), (0, 0), (0, Cout_p - Cout))).astype(x.dtype)
    if bias_o is None:
        b = jnp.zeros((1, Cout_p), jnp.float32)
    else:
        b = jnp.pad(bias_o.astype(jnp.float32).reshape(1, Cout),
                    ((0, 0), (0, Cout_p - Cout)))

    kernel = functools.partial(_norm_conv_kernel, K=K, stride=stride, tile_rows=tile_rows)

    # Rough per-step VMEM (double-buffered blocks + f32 accumulator), clamped so it
    # stays legal on v7x (64 MiB total) while allowing headroom on v5e/v6e.
    itemsize = x.dtype.itemsize
    blk_bytes = (rows_in * Wo * K * Cin * itemsize             # input tile
                 + K * K * Cin * TCO * itemsize                # weight tile
                 + TCO * 4                                     # bias tile
                 + tile_m * TCO * itemsize)                    # output tile
    vmem_limit = int(min(max(4 * blk_bytes + tile_m * TCO * 4, 32 * 1024 * 1024),
                         96 * 1024 * 1024))

    out_flat = pl.pallas_call(
        kernel,
        out_shape=jax.ShapeDtypeStruct((N, n_t * tile_m, Cout_p), x.dtype),
        grid_spec=pltpu.PrefetchScalarGridSpec(
            num_scalar_prefetch=0,
            grid=(N, n_t, n_co),       # co innermost: input tile stays resident across co
            in_specs=[
                pl.BlockSpec((1, rows_in, Wo, K * Cin), lambda n, t, co: (n, t, 0, 0)),
                pl.BlockSpec((K, K * Cin, TCO), lambda n, t, co: (0, 0, co)),
                pl.BlockSpec((1, TCO), lambda n, t, co: (0, co)),
            ],
            out_specs=pl.BlockSpec((1, tile_m, TCO), lambda n, t, co: (n, t, co)),
            scratch_shapes=[pltpu.VMEM((tile_m, TCO), jnp.float32)],
        ),
        compiler_params=pltpu.CompilerParams(
            dimension_semantics=("parallel", "parallel", "parallel"),
            vmem_limit_bytes=vmem_limit,
        ),
    )(x_tiles, w, b)

    out = out_flat.reshape(N, n_t * tile_rows, Wo, Cout_p)[:, :Ho, :, :Cout]
    # TODO(synk): return NHWC directly if the surrounding model can consume it
    # (saves one full HBM transpose pass).
    return jnp.transpose(out, (0, 3, 1, 2))                    # back to NCHW


if __name__ == "__main__":
    # small shapes consistent with the module
    N, Cin, H, W = 2, 4, 16, 16
    Cout, K, stride, padding = 8, 3, 1, 1

    key = jax.random.PRNGKey(0)
    kx, kw, kb = jax.random.split(key, 3)

    x = jax.random.normal(kx, (N, Cin, H, W), dtype=jnp.float32)

    # deterministic init matching reset_parameters():
    # kaiming_uniform_(a=sqrt(5)) -> U(-1/sqrt(fan_in), 1/sqrt(fan_in)); same bound for bias
    fan_in = Cin * K * K
    bound = 1.0 / math.sqrt(fan_in)
    weight = jax.random.uniform(kw, (Cout, Cin, K, K), jnp.float32, -bound, bound)
    bias = jax.random.uniform(kb, (Cout,), jnp.float32, -bound, bound)

    out = normalized_conv2d(x, weight, bias, stride=stride, padding=padding)
    out = jax.block_until_ready(out)

    # silent correctness check against a pure-JAX reference
    w_sum = weight.sum(axis=(2, 3), keepdims=True)
    w_sum = jnp.where(jnp.abs(w_sum) < EPS, jnp.sign(w_sum) * EPS, w_sum)
    w_norm = weight / w_sum
    ref = jax.lax.conv_general_dilated(
        x, w_norm, (stride, stride),
        ((padding, padding), (padding, padding)),
        dimension_numbers=("NCHW", "OIHW", "NCHW"))
    ref = ref + bias[None, :, None, None]
    assert out.shape == (N, Cout, H, W)
    assert jnp.allclose(out, ref, atol=1e-4, rtol=1e-4)

    print("KERNEL_OK")
</pallas_src>

<mosaic_0001>
module attributes {stable_mosaic.version = 11 : i64} {
  func.func @_norm_conv_kernel(%arg0: i32, %arg1: i32, %arg2: i32, %arg3: memref<1x18x16x12xf32, #tpu.memory_space<vmem>>, %arg4: memref<3x12x128xf32, #tpu.memory_space<vmem>>, %arg5: memref<1x128xf32, #tpu.memory_space<vmem>>, %arg6: memref<1x256x128xf32, #tpu.memory_space<vmem>>, %arg7: memref<256x128xf32, #tpu.memory_space<vmem>>) attributes {dimension_semantics = [#tpu.dimension_semantics<parallel>, #tpu.dimension_semantics<parallel>, #tpu.dimension_semantics<parallel>], iteration_bounds = array<i64: 2, 1, 1>, scalar_prefetch = 0 : i64, scratch_operands = 1 : i64, tpu.core_type = #tpu.core_type<tc>, window_params = [{transform_indices = @transform_0, window_bounds = array<i64: 1, 18, 16, 12>}, {transform_indices = @transform_1, window_bounds = array<i64: 3, 12, 128>}, {transform_indices = @transform_2, window_bounds = array<i64: 1, 128>}, {transform_indices = @transform_3, window_bounds = array<i64: 1, 256, 128>}]} {
    %c0 = arith.constant 0 : index
    %c0_0 = arith.constant 0 : index
    %c0_1 = arith.constant 0 : index
    %c0_2 = arith.constant 0 : index
    %0 = vector.load %arg3[%c0, %c0_0, %c0_1, %c0_2] : memref<1x18x16x12xf32, #tpu.memory_space<vmem>>, vector<1x18x16x12xf32>
    %1 = vector.shape_cast %0 : vector<1x18x16x12xf32> to vector<18x16x12xf32>
    %2 = vector.extract_strided_slice %1 {offsets = [0, 0, 0], sizes = [16, 16, 12], strides = [1, 1, 1]} : vector<18x16x12xf32> to vector<16x16x12xf32>
    %3 = vector.shape_cast %2 : vector<16x16x12xf32> to vector<256x12xf32>
    %c0_3 = arith.constant 0 : index
    %c0_4 = arith.constant 0 : index
    %c0_5 = arith.constant 0 : index
    %4 = vector.load %arg4[%c0_3, %c0_4, %c0_5] : memref<3x12x128xf32, #tpu.memory_space<vmem>>, vector<1x12x128xf32>
    %5 = vector.shape_cast %4 : vector<1x12x128xf32> to vector<12x128xf32>
    %cst = arith.constant dense<0.000000e+00> : vector<256x128xf32>
    %6 = tpu.matmul %3, %5, %cst {dimension_numbers = #tpu.dot_dimension_numbers<[1], [0], [0], [1], [0, 0, 1, 1], [], []>} : vector<256x12xf32>, vector<12x128xf32>, vector<256x128xf32> -> vector<256x128xf32>
    %c0_6 = arith.constant 0 : index
    %c0_7 = arith.constant 0 : index
    %7 = vector.load %arg7[%c0_6, %c0_7] : memref<256x128xf32, #tpu.memory_space<vmem>>, vector<256x128xf32>
    tpu.vector_store %arg7[%c0_6, %c0_7], %6 {strides = array<i32>} : memref<256x128xf32, #tpu.memory_space<vmem>>, vector<256x128xf32>,
    %8 = vector.extract_strided_slice %1 {offsets = [1, 0, 0], sizes = [16, 16, 12], strides = [1, 1, 1]} : vector<18x16x12xf32> to vector<16x16x12xf32>
    %9 = vector.shape_cast %8 : vector<16x16x12xf32> to vector<256x12xf32>
    %c1 = arith.constant 1 : index
    %c0_8 = arith.constant 0 : index
    %c0_9 = arith.constant 0 : index
    %10 = vector.load %arg4[%c1, %c0_8, %c0_9] : memref<3x12x128xf32, #tpu.memory_space<vmem>>, vector<1x12x128xf32>
    %11 = vector.shape_cast %10 : vector<1x12x128xf32> to vector<12x128xf32>
    %cst_10 = arith.constant dense<0.000000e+00> : vector<256x128xf32>
    %12 = tpu.matmul %9, %11, %cst_10 {dimension_numbers = #tpu.dot_dimension_numbers<[1], [0], [0], [1], [0, 0, 1, 1], [], []>} : vector<256x12xf32>, vector<12x128xf32>, vector<256x128xf32> -> vector<256x128xf32>
    %c0_11 = arith.constant 0 : index
    %c0_12 = arith.constant 0 : index
    %13 = vector.load %arg7[%c0_11, %c0_12] : memref<256x128xf32, #tpu.memory_space<vmem>>, vector<256x128xf32>
    %14 = arith.addf %13, %12 : vector<256x128xf32>
    %c0_13 = arith.constant 0 : index
    %c0_14 = arith.constant 0 : index
    %15 = vector.load %arg7[%c0_13, %c0_14] : memref<256x128xf32, #tpu.memory_space<vmem>>, vector<256x128xf32>
    tpu.vector_store %arg7[%c0_13, %c0_14], %14 {strides = array<i32>} : memref<256x128xf32, #tpu.memory_space<vmem>>, vector<256x128xf32>,
    %16 = vector.extract_strided_slice %1 {offsets = [2, 0, 0], sizes = [16, 16, 12], strides = [1, 1, 1]} : vector<18x16x12xf32> to vector<16x16x12xf32>
    %17 = vector.shape_cast %16 : vector<16x16x12xf32> to vector<256x12xf32>
    %c2 = arith.constant 2 : index
    %c0_15 = arith.constant 0 : index
    %c0_16 = arith.constant 0 : index
    %18 = vector.load %arg4[%c2, %c0_15, %c0_16] : memref<3x12x128xf32, #tpu.memory_space<vmem>>, vector<1x12x128xf32>
    %19 = vector.shape_cast %18 : vector<1x12x128xf32> to vector<12x128xf32>
    %cst_17 = arith.constant dense<0.000000e+00> : vector<256x128xf32>
    %20 = tpu.matmul %17, %19, %cst_17 {dimension_numbers = #tpu.dot_dimension_numbers<[1], [0], [0], [1], [0, 0, 1, 1], [], []>} : vector<256x12xf32>, vector<12x128xf32>, vector<256x128xf32> -> vector<256x128xf32>
    %c0_18 = arith.constant 0 : index
    %c0_19 = arith.constant 0 : index
    %21 = vector.load %arg7[%c0_18, %c0_19] : memref<256x128xf32, #tpu.memory_space<vmem>>, vector<256x128xf32>
    %22 = arith.addf %21, %20 : vector<256x128xf32>
    %c0_20 = arith.constant 0 : index
    %c0_21 = arith.constant 0 : index
    %23 = vector.load %arg7[%c0_20, %c0_21] : memref<256x128xf32, #tpu.memory_space<vmem>>, vector<256x128xf32>
    tpu.vector_store %arg7[%c0_20, %c0_21], %22 {strides = array<i32>} : memref<256x128xf32, #tpu.memory_space<vmem>>, vector<256x128xf32>,
    %c0_22 = arith.constant 0 : index
    %c0_23 = arith.constant 0 : index
    %24 = vector.load %arg7[%c0_22, %c0_23] : memref<256x128xf32, #tpu.memory_space<vmem>>, vector<256x128xf32>
    %c0_24 = arith.constant 0 : index
    %c0_25 = arith.constant 0 : index
    %25 = vector.load %arg5[%c0_24, %c0_25] : memref<1x128xf32, #tpu.memory_space<vmem>>, vector<1x128xf32>
    %26 = vector.broadcast %25 : vector<1x128xf32> to vector<256x128xf32>
    %27 = arith.addf %24, %26 : vector<256x128xf32>
    %c0_26 = arith.constant 0 : index
    %c0_27 = arith.constant 0 : index
    %c0_28 = arith.constant 0 : index
    %28 = vector.load %arg6[%c0_26, %c0_27, %c0_28] : memref<1x256x128xf32, #tpu.memory_space<vmem>>, vector<1x256x128xf32>
    %29 = vector.shape_cast %28 : vector<1x256x128xf32> to vector<256x128xf32>
    %30 = vector.shape_cast %27 : vector<256x128xf32> to vector<1x256x128xf32>
    tpu.vector_store %arg6[%c0_26, %c0_27, %c0_28], %30 {strides = array<i32>} : memref<1x256x128xf32, #tpu.memory_space<vmem>>, vector<1x256x128xf32>,
    return
  }
  func.func @transform_0(%arg0: i32, %arg1: i32, %arg2: i32) -> (i32, i32, i32, i32) {
    %c0_i32 = arith.constant 0 : i32
    %c0_i32_0 = arith.constant 0 : i32
    %c0_i32_1 = arith.constant 0 : i32
    return %arg0, %arg1, %c0_i32, %c0_i32_0 : i32, i32, i32, i32
  }
  func.func @transform_1(%arg0: i32, %arg1: i32, %arg2: i32) -> (i32, i32, i32) {
    %c0_i32 = arith.constant 0 : i32
    %c0_i32_0 = arith.constant 0 : i32
    %c0_i32_1 = arith.constant 0 : i32
    return %c0_i32, %c0_i32_0, %arg2 : i32, i32, i32
  }
  func.func @transform_2(%arg0: i32, %arg1: i32, %arg2: i32) -> (i32, i32) {
    %c0_i32 = arith.constant 0 : i32
    %c0_i32_0 = arith.constant 0 : i32
    return %c0_i32, %arg2 : i32, i32
  }
  func.func @transform_3(%arg0: i32, %arg1: i32, %arg2: i32) -> (i32, i32, i32) {
    %c0_i32 = arith.constant 0 : i32
    return %arg0, %arg1, %arg2 : i32, i32, i32
  }
}

</mosaic_0001>

<bundles_post_ra>
// kernel: normalized_conv2d.1
= control target key start
LH: loop header
LB: loop body
LE: loop exit
PB: predicated region body
PF: predicated region fallthrough
CT: control target
= control target key end

     0   :  { %s2084_s12 = smov 0   ;;  %s2086_s13 = smov 0   ;;  %s2367_s0 = inlined_call_operand.vmem [shape: f32[2,18,16,12], index: 0, kind: input, shape index: {}]   ;;  %s2368_s1 = inlined_call_operand.vmem [shape: f32[3,12,128], index: 1, kind: input, shape index: {}]   ;;  %s2369_s2 = inlined_call_operand.vmem [shape: f32[1,128], index: 2, kind: input, shape index: {}]   ;;  %s2370_s3 = inlined_call_operand.vmem [shape: f32[2,256,128], index: 3, kind: output, shape index: {}]  }
   0x1   :  { %s2088_s14 = smov 0  }
   0x2 LB: > { %s32_s15 = sadd.s32 1, %s2057_s13  ;;  %p1560_p0 = scmp.ge.s32.totalorder %s2061_s14, 1  ;;  %s2061_s14 = sphi %s2088_s14, %s13_s14   ;;  %s2057_s13 = sphi %s2086_s13, %s2374_s13   ;;  %s2053_s12 = sphi %s2084_s12, %s2373_s12  }
   0x3   : > { %p34_p1 = scmp.ge.s32.totalorder %s32_s15, 2  ;;  %p185_p2 = scmp.lt.s32.totalorder %s2061_s14, 3 }
   0x5   : > { %s2376_s15 = smov (%p34_p1, %s32_s15), 0  ;;  %p186_p3 = pnand %p1560_p0, %p185_p2 }
   0x6   : > { %v295_v0 = vld [vmem:[%s2368_s1] sm:$0xff] (!%p186_p3)  ;;  %v296_v1 = vld [vmem:[%s2368_s1 + $0x8] sm:$0xf] (!%p186_p3)  ;;  %vm394_vm0 = vcmask (!%p186_p3), 1043456   ;;  %v1597_v2 = vld [vmem:[%s2368_s1 + $0x10] sm:$0xff] (!%p186_p3)  ;;  %vm2063_vm1 = vmmov (!%p186_p3), 1  }
   0x7   : > { %189 = sbr.rel (%p186_p3) target bundleno = 330 (0x14a), region = 32  ;;  %v1929_v3 = vpack.c.bf16 (!%p186_p3), %v296_v1, %v295_v0  ;;  %vm2111_vm2 = vmpackc.low (!%p186_p3), %vm394_vm0, %vm2063_vm1  ;;  %v1598_v5 = vld [vmem:[%s2368_s1 + $0x18] sm:$0xf] (!%p186_p3)  ;;  %p229_p4 = scmp.lt.s32.totalorder (!%p186_p3), %s2053_s12, 1  ;;  %v1632_v6 = vld [vmem:[%s2368_s1 + $0x20] sm:$0xff] (!%p186_p3)  ;;  %vm297_vm3 = vcmask (!%p186_p3), 97280  }
   0x8   : > { %v1935_v7 = vpack.c.bf16 (!%p186_p3), %v1598_v5, %v1597_v2  ;;  %v1633_v8 = vld [vmem:[%s2368_s1 + $0x28] sm:$0xf] (!%p186_p3)  ;;  %v2286_v63 = vld [vmem:[%s2369_s2] ss:$0 sm:$0xff] (!%p186_p3) }
   0x9   : > { %1931 = vmatprep.subr.msk.bf16.mxu1 (!%p186_p3), %vm2111_vm2, %v1929_v3  ;;  %v1941_v9 = vpack.c.bf16 (!%p186_p3), %v1633_v8, %v1632_v6 }
   0xa   : > { %1937 = vmatprep.subr.msk.bf16.mxu0 (!%p186_p3), %vm2111_vm2, %v1935_v7  ;;  %1934 = vmatpush3.bf16.msk.msra.mxu1 (!%p186_p3), %vm2111_vm2, %v1929_v3 }
   0xb   : > { %1940 = vmatpush3.bf16.msk.msra.mxu0 (!%p186_p3), %vm2111_vm2, %v1935_v7  ;;  %1947 = vmatprep.subr.msk.bf16.mxu1 (!%p186_p3), %vm2111_vm2, %v1935_v7 }
   0xc   : > { %1943 = vmatprep.subr.msk.bf16.mxu0 (!%p186_p3), %vm2111_vm2, %v1941_v9 }
   0xe   : > { %s2378_s12 = smov (!%p229_p4, %s2053_s12), 1 }
   0xf   : > { %s2013_s28 = smul.u32 288, %s2378_s12  ;;  %s1670_s5 = sshll.u32 %s2378_s12, 8 }
  0x10   : > { %s2291_s10 = scalar_lea.vmem %s2370_s3, %s1670_s5 }
  0x11   : > { %s2142_s4 = scalar_lea.vmem %s2367_s0, %s2013_s28 }
  0x12   : > { %v259_v10 = vld [vmem:[%s2142_s4] sm:$0xff]  ;;  %v261_v11 = vld [vmem:[%s2142_s4 + $0x10] sm:$0xff]  ;;  %v260_v12 = vld [vmem:[%s2142_s4 + $0x8] sm:$0xff] }
  0x13   : > { %1777 = vmatprep.mubr.msk.f32.mxu1 %vm297_vm3, %v259_v10  ;;  %1829 = vmatprep.mubr.msk.f32.mxu0 %vm297_vm3, %v261_v11  ;;  %v262_v13 = vld [vmem:[%s2142_s4 + $0x18] sm:$0xff]  ;;  %v263_v14 = vld [vmem:[%s2142_s4 + $0x20] sm:$0xff]  ;;  %v264_v15 = vld [vmem:[%s2142_s4 + $0x28] sm:$0xff] }
  0x14   : > { %1778 = vmatmul.mubr.msk.f32.vlgmr.msra.gmra.mrb[0].mxu1 %vm297_vm3, %v260_v12  ;;  %1830 = vmatmul.mubr.msk.f32.vlgmr.msra.gmra.mrb[0].mxu0 %vm297_vm3, %v262_v13  ;;  %v265_v16 = vld [vmem:[%s2142_s4 + $0x30] sm:$0xff]  ;;  %v266_v17 = vld [vmem:[%s2142_s4 + $0x38] sm:$0xff]  ;;  %v267_v18 = vld [vmem:[%s2142_s4 + $0x40] sm:$0xff] }
  0x15   : > { %1948 = vmatpush3.bf16.msk.msra.mxu1 %vm2111_vm2, %v1935_v7  ;;  %1946 = vmatpush3.bf16.msk.msra.mxu0 %vm2111_vm2, %v1941_v9  ;;  %v268_v19 = vld [vmem:[%s2142_s4 + $0x48] sm:$0xff]  ;;  %v269_v20 = vld [vmem:[%s2142_s4 + $0x50] sm:$0xff]  ;;  %v270_v21 = vld [vmem:[%s2142_s4 + $0x58] sm:$0xff] }
  0x16   : > { %1780 = vmatprep.mubr.msk.f32.mxu1 %vm297_vm3, %v261_v11  ;;  %1832 = vmatprep.mubr.msk.f32.mxu0 %vm297_vm3, %v263_v14  ;;  %v271_v22 = vld [vmem:[%s2142_s4 + $0x60] sm:$0xff]  ;;  %v272_v23 = vld [vmem:[%s2142_s4 + $0x68] sm:$0xff]  ;;  %v273_v24 = vld [vmem:[%s2142_s4 + $0x70] sm:$0xff] }
  0x17   : > { %v274_v25 = vld [vmem:[%s2142_s4 + $0x78] sm:$0xff]  ;;  %v275_v26 = vld [vmem:[%s2142_s4 + $0x80] sm:$0xff]  ;;  %v276_v27 = vld [vmem:[%s2142_s4 + $0x88] sm:$0xff] }
  0x18   : > { %1781 = vmatmul.mubr.msk.f32.gmra.mrb[2].mxu1 %vm297_vm3, %v262_v13  ;;  %1833 = vmatmul.mubr.msk.f32.gmra.mrb[2].mxu0 %vm297_vm3, %v264_v15  ;;  %v277_v28 = vld [vmem:[%s2142_s4 + $0x90] sm:$0xff]  ;;  %v278_v29 = vld [vmem:[%s2142_s4 + $0x98] sm:$0xff]  ;;  %v279_v30 = vld [vmem:[%s2142_s4 + $0xa0] sm:$0xff] }
  0x19   : > { %1783 = vmatprep.mubr.msk.f32.mxu1 %vm297_vm3, %v263_v14  ;;  %1835 = vmatprep.mubr.msk.f32.mxu0 %vm297_vm3, %v265_v16  ;;  %v280_v31 = vld [vmem:[%s2142_s4 + $0xa8] sm:$0xff]  ;;  %v281_v32 = vld [vmem:[%s2142_s4 + $0xb0] sm:$0xff]  ;;  %v282_v33 = vld [vmem:[%s2142_s4 + $0xb8] sm:$0xff] }
  0x1a   : > { %v283_v34 = vld [vmem:[%s2142_s4 + $0xc0] sm:$0xff]  ;;  %v284_v35 = vld [vmem:[%s2142_s4 + $0xc8] sm:$0xff]  ;;  %v285_v36 = vld [vmem:[%s2142_s4 + $0xd0] sm:$0xff] }
  0x1b   : > { %v286_v37 = vld [vmem:[%s2142_s4 + $0xd8] sm:$0xff]  ;;  %v287_v38 = vld [vmem:[%s2142_s4 + $0xe0] sm:$0xff]  ;;  %v288_v39 = vld [vmem:[%s2142_s4 + $0xe8] sm:$0xff] }
  0x1c   : > { %1784 = vmatmul.mubr.msk.f32.gmra.mrb[4].mxu1 %vm297_vm3, %v264_v15  ;;  %1836 = vmatmul.mubr.msk.f32.gmra.mrb[4].mxu0 %vm297_vm3, %v266_v17  ;;  %v289_v40 = vld [vmem:[%s2142_s4 + $0xf0] sm:$0xff]  ;;  %v290_v41 = vld [vmem:[%s2142_s4 + $0xf8] sm:$0xff]  ;;  %v291_v42 = vld [vmem:[%s2142_s4 + $0x100] sm:$0xff] }
  0x1d   : > { %1786 = vmatprep.mubr.msk.f32.mxu1 %vm297_vm3, %v265_v16  ;;  %1838 = vmatprep.mubr.msk.f32.mxu0 %vm297_vm3, %v267_v18  ;;  %v292_v43 = vld [vmem:[%s2142_s4 + $0x108] sm:$0xff]  ;;  %v293_v44 = vld [vmem:[%s2142_s4 + $0x110] sm:$0xff]  ;;  %v294_v45 = vld [vmem:[%s2142_s4 + $0x118] sm:$0xff] }
  0x20   : > { %1787 = vmatmul.mubr.msk.f32.gmra.mrb[6].mxu1 %vm297_vm3, %v266_v17  ;;  %1839 = vmatmul.mubr.msk.f32.gmra.mrb[6].mxu0 %vm297_vm3, %v268_v19 }
  0x21   : > { %1789 = vmatprep.mubr.msk.f32.mxu1 %vm297_vm3, %v267_v18  ;;  %1841 = vmatprep.mubr.msk.f32.mxu0 %vm297_vm3, %v269_v20 }
  0x24   : > { %1790 = vmatmul.mubr.msk.f32.gmra.mrb[8].mxu1 %vm297_vm3, %v268_v19  ;;  %1842 = vmatmul.mubr.msk.f32.gmra.mrb[8].mxu0 %vm297_vm3, %v270_v21 }
  0x25   : > { %1792 = vmatprep.mubr.msk.f32.mxu1 %vm297_vm3, %v269_v20  ;;  %1844 = vmatprep.mubr.msk.f32.mxu0 %vm297_vm3, %v271_v22 }
  0x28   : > { %1793 = vmatmul.mubr.msk.f32.gmra.mrb[10].mxu1 %vm297_vm3, %v270_v21  ;;  %1845 = vmatmul.mubr.msk.f32.gmra.mrb[10].mxu0 %vm297_vm3, %v272_v23 }
  0x29   : > { %1795 = vmatprep.mubr.msk.f32.mxu1 %vm297_vm3, %v271_v22  ;;  %1847 = vmatprep.mubr.msk.f32.mxu0 %vm297_vm3, %v273_v24 }
  0x2c   : > { %1796 = vmatmul.mubr.msk.f32.gmra.mrb[12].mxu1 %vm297_vm3, %v272_v23  ;;  %1848 = vmatmul.mubr.msk.f32.gmra.mrb[12].mxu0 %vm297_vm3, %v274_v25 }
  0x2d   : > { %1798 = vmatprep.mubr.msk.f32.mxu1 %vm297_vm3, %v273_v24  ;;  %1850 = vmatprep.mubr.msk.f32.mxu0 %vm297_vm3, %v275_v26 }
  0x30   : > { %1799 = vmatmul.mubr.msk.f32.gmra.mrb[14].mxu1 %vm297_vm3, %v274_v25  ;;  %1851 = vmatmul.mubr.msk.f32.gmra.mrb[14].mxu0 %vm297_vm3, %v276_v27 }
  0x31   : > { %1801 = vmatprep.mubr.msk.f32.mxu1 %vm297_vm3, %v275_v26  ;;  %1881 = vmatprep.mubr.msk.f32.mxu0 %vm297_vm3, %v263_v14 }
  0x34   : > { %1802 = vmatmul.mubr.msk.f32.gmra.mrb[16].mxu1 %vm297_vm3, %v276_v27  ;;  %1882 = vmatmul.mubr.msk.f32.vlgmr.msra.gmra.mrb[0].mxu0 %vm297_vm3, %v264_v15 }
  0x35   : > { %1804 = vmatprep.mubr.msk.f32.mxu1 %vm297_vm3, %v277_v28  ;;  %1884 = vmatprep.mubr.msk.f32.mxu0 %vm297_vm3, %v265_v16 }
  0x38   : > { %1805 = vmatmul.mubr.msk.f32.gmra.mrb[18].mxu1 %vm297_vm3, %v278_v29  ;;  %1885 = vmatmul.mubr.msk.f32.gmra.mrb[2].mxu0 %vm297_vm3, %v266_v17 }
  0x39   : > { %1807 = vmatprep.mubr.msk.f32.mxu1 %vm297_vm3, %v279_v30  ;;  %1887 = vmatprep.mubr.msk.f32.mxu0 %vm297_vm3, %v267_v18 }
  0x3c   : > { %1808 = vmatmul.mubr.msk.f32.gmra.mrb[20].mxu1 %vm297_vm3, %v280_v31  ;;  %1888 = vmatmul.mubr.msk.f32.gmra.mrb[4].mxu0 %vm297_vm3, %v268_v19 }
  0x3d   : > { %1810 = vmatprep.mubr.msk.f32.mxu1 %vm297_vm3, %v281_v32  ;;  %1890 = vmatprep.mubr.msk.f32.mxu0 %vm297_vm3, %v269_v20 }
  0x40   : > { %1811 = vmatmul.mubr.msk.f32.gmra.mrb[22].mxu1 %vm297_vm3, %v282_v33  ;;  %1891 = vmatmul.mubr.msk.f32.gmra.mrb[6].mxu0 %vm297_vm3, %v270_v21 }
  0x41   : > { %1813 = vmatprep.mubr.msk.f32.mxu1 %vm297_vm3, %v283_v34  ;;  %1893 = vmatprep.mubr.msk.f32.mxu0 %vm297_vm3, %v271_v22 }
  0x44   : > { %1814 = vmatmul.mubr.msk.f32.gmra.mrb[24].mxu1 %vm297_vm3, %v284_v35  ;;  %1894 = vmatmul.mubr.msk.f32.gmra.mrb[8].mxu0 %vm297_vm3, %v272_v23 }
  0x45   : > { %1816 = vmatprep.mubr.msk.f32.mxu1 %vm297_vm3, %v285_v36  ;;  %1896 = vmatprep.mubr.msk.f32.mxu0 %vm297_vm3, %v273_v24 }
  0x48   : > { %1817 = vmatmul.mubr.msk.f32.gmra.mrb[26].mxu1 %vm297_vm3, %v286_v37  ;;  %1897 = vmatmul.mubr.msk.f32.gmra.mrb[10].mxu0 %vm297_vm3, %v274_v25 }
  0x49   : > { %1819 = vmatprep.mubr.msk.f32.mxu1 %vm297_vm3, %v287_v38  ;;  %1899 = vmatprep.mubr.msk.f32.mxu0 %vm297_vm3, %v275_v26 }
  0x4c   : > { %1820 = vmatmul.mubr.msk.f32.gmra.mrb[28].mxu1 %vm297_vm3, %v288_v39  ;;  %1900 = vmatmul.mubr.msk.f32.gmra.mrb[12].mxu0 %vm297_vm3, %v276_v27 }
  0x4d   : > { %1822 = vmatprep.mubr.msk.f32.mxu1 %vm297_vm3, %v289_v40  ;;  %1902 = vmatprep.mubr.msk.f32.mxu0 %vm297_vm3, %v277_v28 }
  0x50   : > { %1823 = vmatmul.mubr.msk.f32.gmra.mrb[30].mxu1 %vm297_vm3, %v290_v41  ;;  %1903 = vmatmul.mubr.msk.f32.gmra.mrb[14].mxu0 %vm297_vm3, %v278_v29 }
  0x51   : > { %1853 = vmatprep.mubr.msk.f32.mxu1 %vm297_vm3, %v277_v28  ;;  %1905 = vmatprep.mubr.msk.f32.mxu0 %vm297_vm3, %v279_v30 }
  0x54   : > { %1854 = vmatmul.mubr.msk.f32.vlgmr.msra.gmra.mrb[16].mxu1 %vm297_vm3, %v278_v29  ;;  %1906 = vmatmul.mubr.msk.f32.gmra.mrb[16].mxu0 %vm297_vm3, %v280_v31 }
  0x55   : > { %1856 = vmatprep.mubr.msk.f32.mxu1 %vm297_vm3, %v279_v30  ;;  %1908 = vmatprep.mubr.msk.f32.mxu0 %vm297_vm3, %v281_v32 }
  0x58   : > { %1857 = vmatmul.mubr.msk.f32.gmra.mrb[18].mxu1 %vm297_vm3, %v280_v31  ;;  %1909 = vmatmul.mubr.msk.f32.gmra.mrb[18].mxu0 %vm297_vm3, %v282_v33 }
  0x59   : > { %1859 = vmatprep.mubr.msk.f32.mxu1 %vm297_vm3, %v281_v32  ;;  %1911 = vmatprep.mubr.msk.f32.mxu0 %vm297_vm3, %v283_v34 }
  0x5c   : > { %1860 = vmatmul.mubr.msk.f32.gmra.mrb[20].mxu1 %vm297_vm3, %v282_v33  ;;  %1912 = vmatmul.mubr.msk.f32.gmra.mrb[20].mxu0 %vm297_vm3, %v284_v35 }
  0x5d   : > { %1862 = vmatprep.mubr.msk.f32.mxu1 %vm297_vm3, %v283_v34  ;;  %1914 = vmatprep.mubr.msk.f32.mxu0 %vm297_vm3, %v285_v36 }
  0x60   : > { %1863 = vmatmul.mubr.msk.f32.gmra.mrb[22].mxu1 %vm297_vm3, %v284_v35  ;;  %1915 = vmatmul.mubr.msk.f32.gmra.mrb[22].mxu0 %vm297_vm3, %v286_v37 }
  0x61   : > { %1865 = vmatprep.mubr.msk.f32.mxu1 %vm297_vm3, %v285_v36  ;;  %1917 = vmatprep.mubr.msk.f32.mxu0 %vm297_vm3, %v287_v38 }
  0x64   : > { %1866 = vmatmul.mubr.msk.f32.gmra.mrb[24].mxu1 %vm297_vm3, %v286_v37  ;;  %1918 = vmatmul.mubr.msk.f32.gmra.mrb[24].mxu0 %vm297_vm3, %v288_v39 }
  0x65   : > { %1868 = vmatprep.mubr.msk.f32.mxu1 %vm297_vm3, %v287_v38  ;;  %1920 = vmatprep.mubr.msk.f32.mxu0 %vm297_vm3, %v289_v40 }
  0x68   : > { %1869 = vmatmul.mubr.msk.f32.gmra.mrb[26].mxu1 %vm297_vm3, %v288_v39  ;;  %1921 = vmatmul.mubr.msk.f32.gmra.mrb[26].mxu0 %vm297_vm3, %v290_v41 }
  0x69   : > { %1871 = vmatprep.mubr.msk.f32.mxu1 %vm297_vm3, %v289_v40  ;;  %1923 = vmatprep.mubr.msk.f32.mxu0 %vm297_vm3, %v291_v42 }
  0x6c   : > { %1872 = vmatmul.mubr.msk.f32.gmra.mrb[28].mxu1 %vm297_vm3, %v290_v41  ;;  %1924 = vmatmul.mubr.msk.f32.gmra.mrb[28].mxu0 %vm297_vm3, %v292_v43 }
  0x6d   : > { %1874 = vmatprep.mubr.msk.f32.mxu1 %vm297_vm3, %v291_v42  ;;  %1926 = vmatprep.mubr.msk.f32.mxu0 %vm297_vm3, %v293_v44 }
  0x70   : > { %1875 = vmatmul.mubr.msk.f32.gmra.mrb[30].mxu1 %vm297_vm3, %v292_v43  ;;  %1927 = vmatmul.mubr.msk.f32.gmra.mrb[30].mxu0 %vm297_vm3, %v294_v45 }
  0xe7   : > { %v1779_v46 = vpop.f32.mrb[0].mxu1 }
  0xe8   : > { %v464_v47 = vpop.f32.mrb[1].mxu1 }
  0xeb   : > { %v1782_v48 = vpop.f32.mrb[2].mxu1 }
  0xec   : > { %v474_v49 = vpop.f32.mrb[3].mxu1 }
  0xef   : > { %v1785_v50 = vpop.f32.mrb[4].mxu1 }
  0xf0   : > { %v484_v51 = vpop.f32.mrb[5].mxu1 }
  0xf3   : > { %v1788_v52 = vpop.f32.mrb[6].mxu1 }
  0xf4   : > { %v494_v53 = vpop.f32.mrb[7].mxu1 }
  0xf7   : > { %v1791_v54 = vpop.f32.mrb[8].mxu1 }
  0xf8   : > { %v504_v55 = vpop.f32.mrb[9].mxu1 }
  0xfb   : > { %v1794_v56 = vpop.f32.mrb[10].mxu1 }
  0xfc   : > { %v514_v57 = vpop.f32.mrb[11].mxu1 }
  0xff   : > { %v1797_v58 = vpop.f32.mrb[12].mxu1 }
 0x100   : > { %v524_v59 = vpop.f32.mrb[13].mxu1 }
 0x103   : > { %v1800_v60 = vpop.f32.mrb[14].mxu1 }
 0x104   : > { %v2280_v61 = vpop.f32.mrb[15].mxu1 }
 0x107   : > { %v1883_v62 = vpop.f32.mrb[0].mxu0 }
 0x108   : > { %v1949_v0 = vadd.f32 %v1883_v62, %v1779_v46  ;;  %v1066_v1 = vpop.f32.mrb[1].mxu0 }
 0x109   : > { %v1950_v2 = vadd.f32 %v1066_v1, %v464_v47 }
 0x10a   : > { %v1361_v3 = vadd.f32 %v1949_v0, %v2286_v63 }
 0x10b   : > { %v1360_v4 = vadd.f32 %v1950_v2, %v2286_v63  ;;  %v1886_v5 = vpop.f32.mrb[2].mxu0 }
 0x10c   : > { %1393 = vst [vmem:[%s2291_s10 + $0x8] sm:$0xff] %v1361_v3  ;;  %v1951_v6 = vadd.f32 %v1886_v5, %v1782_v48  ;;  %v1076_v7 = vpop.f32.mrb[3].mxu0 }
 0x10d   : > { %1392 = vst [vmem:[%s2291_s10] sm:$0xff] %v1360_v4  ;;  %v1952_v8 = vadd.f32 %v1076_v7, %v474_v49 }
 0x10e   : > { %v1363_v9 = vadd.f32 %v1951_v6, %v2286_v63 }
 0x10f   : > { %v1362_v10 = vadd.f32 %v1952_v8, %v2286_v63  ;;  %v1889_v11 = vpop.f32.mrb[4].mxu0 }
 0x110   : > { %1395 = vst [vmem:[%s2291_s10 + $0x18] sm:$0xff] %v1363_v9  ;;  %v1953_v12 = vadd.f32 %v1889_v11, %v1785_v50  ;;  %v1086_v13 = vpop.f32.mrb[5].mxu0 }
 0x111   : > { %1394 = vst [vmem:[%s2291_s10 + $0x10] sm:$0xff] %v1362_v10  ;;  %v1954_v14 = vadd.f32 %v1086_v13, %v484_v51 }
 0x112   : > { %v1365_v15 = vadd.f32 %v1953_v12, %v2286_v63 }
 0x113   : > { %v1364_v16 = vadd.f32 %v1954_v14, %v2286_v63  ;;  %v1892_v17 = vpop.f32.mrb[6].mxu0 }
 0x114   : > { %1397 = vst [vmem:[%s2291_s10 + $0x28] sm:$0xff] %v1365_v15  ;;  %v1955_v18 = vadd.f32 %v1892_v17, %v1788_v52  ;;  %v1096_v19 = vpop.f32.mrb[7].mxu0 }
 0x115   : > { %1396 = vst [vmem:[%s2291_s10 + $0x20] sm:$0xff] %v1364_v16  ;;  %v1956_v20 = vadd.f32 %v1096_v19, %v494_v53 }
 0x116   : > { %v1367_v21 = vadd.f32 %v1955_v18, %v2286_v63 }
 0x117   : > { %v1366_v22 = vadd.f32 %v1956_v20, %v2286_v63  ;;  %v1895_v23 = vpop.f32.mrb[8].mxu0 }
 0x118   : > { %1399 = vst [vmem:[%s2291_s10 + $0x38] sm:$0xff] %v1367_v21  ;;  %v1957_v24 = vadd.f32 %v1895_v23, %v1791_v54  ;;  %v1106_v25 = vpop.f32.mrb[9].mxu0 }
 0x119   : > { %1398 = vst [vmem:[%s2291_s10 + $0x30] sm:$0xff] %v1366_v22  ;;  %v1958_v26 = vadd.f32 %v1106_v25, %v504_v55 }
 0x11a   : > { %v1369_v27 = vadd.f32 %v1957_v24, %v2286_v63 }
 0x11b   : > { %v1368_v28 = vadd.f32 %v1958_v26, %v2286_v63  ;;  %v1898_v29 = vpop.f32.mrb[10].mxu0 }
 0x11c   : > { %1401 = vst [vmem:[%s2291_s10 + $0x48] sm:$0xff] %v1369_v27  ;;  %v1959_v30 = vadd.f32 %v1898_v29, %v1794_v56  ;;  %v1116_v31 = vpop.f32.mrb[11].mxu0 }
 0x11d   : > { %1400 = vst [vmem:[%s2291_s10 + $0x40] sm:$0xff] %v1368_v28  ;;  %v1960_v32 = vadd.f32 %v1116_v31, %v514_v57 }
 0x11e   : > { %v1371_v33 = vadd.f32 %v1959_v30, %v2286_v63 }
 0x11f   : > { %v1370_v34 = vadd.f32 %v1960_v32, %v2286_v63  ;;  %v1901_v35 = vpop.f32.mrb[12].mxu0 }
 0x120   : > { %1403 = vst [vmem:[%s2291_s10 + $0x58] sm:$0xff] %v1371_v33  ;;  %v1961_v36 = vadd.f32 %v1901_v35, %v1797_v58  ;;  %v1126_v37 = vpop.f32.mrb[13].mxu0 }
 0x121   : > { %1402 = vst [vmem:[%s2291_s10 + $0x50] sm:$0xff] %v1370_v34  ;;  %v1962_v38 = vadd.f32 %v1126_v37, %v524_v59 }
 0x122   : > { %v1373_v39 = vadd.f32 %v1961_v36, %v2286_v63 }
 0x123   : > { %v1372_v40 = vadd.f32 %v1962_v38, %v2286_v63  ;;  %v1904_v41 = vpop.f32.mrb[14].mxu0 }
 0x124   : > { %1405 = vst [vmem:[%s2291_s10 + $0x68] sm:$0xff] %v1373_v39  ;;  %v1963_v42 = vadd.f32 %v1904_v41, %v1800_v60  ;;  %v1136_v43 = vpop.f32.mrb[15].mxu0 }
 0x125   : > { %1404 = vst [vmem:[%s2291_s10 + $0x60] sm:$0xff] %v1372_v40  ;;  %v1964_v44 = vadd.f32 %v1136_v43, %v2280_v61 }
 0x126   : > { %v1375_v45 = vadd.f32 %v1963_v42, %v2286_v63 }
 0x127   : > { %v1374_v46 = vadd.f32 %v1964_v44, %v2286_v63  ;;  %v1855_v47 = vpop.f32.mrb[16].mxu1  ;;  %v1907_v48 = vpop.f32.mrb[16].mxu0 }
 0x128   : > { %1407 = vst [vmem:[%s2291_s10 + $0x78] sm:$0xff] %v1375_v45  ;;  %v1965_v49 = vadd.f32 %v1907_v48, %v1855_v47  ;;  %v813_v50 = vpop.f32.mrb[17].mxu1  ;;  %v1146_v51 = vpop.f32.mrb[17].mxu0 }
 0x129   : > { %1406 = vst [vmem:[%s2291_s10 + $0x70] sm:$0xff] %v1374_v46  ;;  %v1966_v52 = vadd.f32 %v1146_v51, %v813_v50 }
 0x12a   : > { %v1377_v53 = vadd.f32 %v1965_v49, %v2286_v63 }
 0x12b   : > { %v1376_v54 = vadd.f32 %v1966_v52, %v2286_v63  ;;  %v1858_v55 = vpop.f32.mrb[18].mxu1  ;;  %v1910_v56 = vpop.f32.mrb[18].mxu0 }
 0x12c   : > { %1409 = vst [vmem:[%s2291_s10 + $0x88] sm:$0xff] %v1377_v53  ;;  %v1967_v57 = vadd.f32 %v1910_v56, %v1858_v55  ;;  %v823_v58 = vpop.f32.mrb[19].mxu1  ;;  %v1156_v59 = vpop.f32.mrb[19].mxu0 }
 0x12d   : > { %1408 = vst [vmem:[%s2291_s10 + $0x80] sm:$0xff] %v1376_v54  ;;  %v1968_v60 = vadd.f32 %v1156_v59, %v823_v58 }
 0x12e   : > { %v1379_v61 = vadd.f32 %v1967_v57, %v2286_v63 }
 0x12f   : > { %v1378_v62 = vadd.f32 %v1968_v60, %v2286_v63  ;;  %v1861_v0 = vpop.f32.mrb[20].mxu1  ;;  %v1913_v1 = vpop.f32.mrb[20].mxu0 }
 0x130   : > { %1411 = vst [vmem:[%s2291_s10 + $0x98] sm:$0xff] %v1379_v61  ;;  %v1969_v2 = vadd.f32 %v1913_v1, %v1861_v0  ;;  %v833_v3 = vpop.f32.mrb[21].mxu1  ;;  %v1166_v4 = vpop.f32.mrb[21].mxu0 }
 0x131   : > { %1410 = vst [vmem:[%s2291_s10 + $0x90] sm:$0xff] %v1378_v62  ;;  %v1970_v5 = vadd.f32 %v1166_v4, %v833_v3 }
 0x132   : > { %v1381_v6 = vadd.f32 %v1969_v2, %v2286_v63 }
 0x133   : > { %v1380_v7 = vadd.f32 %v1970_v5, %v2286_v63  ;;  %v1864_v8 = vpop.f32.mrb[22].mxu1  ;;  %v1916_v9 = vpop.f32.mrb[22].mxu0 }
 0x134   : > { %1413 = vst [vmem:[%s2291_s10 + $0xa8] sm:$0xff] %v1381_v6  ;;  %v1971_v10 = vadd.f32 %v1916_v9, %v1864_v8  ;;  %v843_v11 = vpop.f32.mrb[23].mxu1  ;;  %v1176_v12 = vpop.f32.mrb[23].mxu0 }
 0x135   : > { %1412 = vst [vmem:[%s2291_s10 + $0xa0] sm:$0xff] %v1380_v7  ;;  %v1972_v13 = vadd.f32 %v1176_v12, %v843_v11 }
 0x136   : > { %v1383_v14 = vadd.f32 %v1971_v10, %v2286_v63 }
 0x137   : > { %v1382_v15 = vadd.f32 %v1972_v13, %v2286_v63  ;;  %v1867_v16 = vpop.f32.mrb[24].mxu1  ;;  %v1919_v17 = vpop.f32.mrb[24].mxu0 }
 0x138   : > { %1415 = vst [vmem:[%s2291_s10 + $0xb8] sm:$0xff] %v1383_v14  ;;  %v1973_v18 = vadd.f32 %v1919_v17, %v1867_v16  ;;  %v853_v19 = vpop.f32.mrb[25].mxu1  ;;  %v1186_v20 = vpop.f32.mrb[25].mxu0 }
 0x139   : > { %1414 = vst [vmem:[%s2291_s10 + $0xb0] sm:$0xff] %v1382_v15  ;;  %v1974_v21 = vadd.f32 %v1186_v20, %v853_v19 }
 0x13a   : > { %v1385_v22 = vadd.f32 %v1973_v18, %v2286_v63 }
 0x13b   : > { %v1384_v23 = vadd.f32 %v1974_v21, %v2286_v63  ;;  %v1870_v24 = vpop.f32.mrb[26].mxu1  ;;  %v1922_v25 = vpop.f32.mrb[26].mxu0 }
 0x13c   : > { %1417 = vst [vmem:[%s2291_s10 + $0xc8] sm:$0xff] %v1385_v22  ;;  %v1975_v26 = vadd.f32 %v1922_v25, %v1870_v24  ;;  %v863_v27 = vpop.f32.mrb[27].mxu1  ;;  %v1196_v28 = vpop.f32.mrb[27].mxu0 }
 0x13d   : > { %1416 = vst [vmem:[%s2291_s10 + $0xc0] sm:$0xff] %v1384_v23  ;;  %v1976_v29 = vadd.f32 %v1196_v28, %v863_v27 }
 0x13e   : > { %v1387_v30 = vadd.f32 %v1975_v26, %v2286_v63 }
 0x13f   : > { %v1386_v31 = vadd.f32 %v1976_v29, %v2286_v63  ;;  %v1873_v32 = vpop.f32.mrb[28].mxu1  ;;  %v1925_v33 = vpop.f32.mrb[28].mxu0 }
 0x140   : > { %1419 = vst [vmem:[%s2291_s10 + $0xd8] sm:$0xff] %v1387_v30  ;;  %v1977_v34 = vadd.f32 %v1925_v33, %v1873_v32  ;;  %v873_v35 = vpop.f32.mrb[29].mxu1  ;;  %v1206_v36 = vpop.f32.mrb[29].mxu0 }
 0x141   : > { %1418 = vst [vmem:[%s2291_s10 + $0xd0] sm:$0xff] %v1386_v31  ;;  %v1978_v37 = vadd.f32 %v1206_v36, %v873_v35 }
 0x142   : > { %v1389_v38 = vadd.f32 %v1977_v34, %v2286_v63 }
 0x143   : > { %v1388_v39 = vadd.f32 %v1978_v37, %v2286_v63  ;;  %v1876_v40 = vpop.f32.mrb[30].mxu1  ;;  %v1928_v41 = vpop.f32.mrb[30].mxu0 }
 0x144   : > { %1421 = vst [vmem:[%s2291_s10 + $0xe8] sm:$0xff] %v1389_v38  ;;  %v1979_v42 = vadd.f32 %v1928_v41, %v1876_v40  ;;  %v883_v43 = vpop.f32.mrb[31].mxu1  ;;  %v1216_v44 = vpop.f32.mrb[31].mxu0 }
 0x145   : > { %1420 = vst [vmem:[%s2291_s10 + $0xe0] sm:$0xff] %v1388_v39  ;;  %v1980_v45 = vadd.f32 %v1216_v44, %v883_v43 }
 0x146   : > { %v1391_v46 = vadd.f32 %v1979_v42, %v2286_v63 }
 0x147   : > { %v1390_v47 = vadd.f32 %v1980_v45, %v2286_v63 }
 0x148   : > { %1423 = vst [vmem:[%s2291_s10 + $0xf8] sm:$0xff] %v1391_v46 }
 0x149   : > { %1422 = vst [vmem:[%s2291_s10 + $0xf0] sm:$0xff] %v1390_v47 }
 0x14a PF: > { %s13_s14 = sadd.s32 1, %s2061_s14   ;;  %s2373_s12 = smov %s2057_s13 }
 0x14b   : > { %p10_p5 = scmp.ge.s32.totalorder %s13_s14, 4   ;;  %s2374_s13 = smov %s2376_s15 }
 0x14d   :  { %12 = sbr.rel (!%p10_p5) target bundleno = 2 (0x2), region = 70 }

</bundles_post_ra>
